<compile_context>
chip_gen: v5e
topology: v5e:2x2
jax: 0.10.0
libtpu: 0.0.40
codegen_flags: <defaults>
</compile_context>

<pallas_src>
import functools

import jax
import jax.numpy as jnp
from jax.experimental import pallas as pl
from jax.experimental.pallas import tpu as pltpu


def _round_up(v, m):
    return ((v + m - 1) // m) * m


def _round_down(v, m):
    return (v // m) * m


def _pad_to(a, shape):
    return jnp.pad(a, [(0, t - s) for s, t in zip(a.shape, shape)])


def _vmem_limit_bytes():
    """Generation-aware VMEM limit: ~7/8 of capacity (128 MiB v5e/v6e, 64 MiB
    per-TC on v7x), conservative fallback if the query is unavailable."""
    cap = 64 * 1024 * 1024
    try:
        cap = int(getattr(pltpu.get_tpu_info(), "vmem_capacity_bytes", cap))
    except Exception:
        pass
    return max(32 * 1024 * 1024, min(cap - (cap >> 3), 112 * 1024 * 1024))


def _choose_tiling(n, feature_dims, vmem_limit):
    """Pick the row tile (= MXU M dim) and the padded node count.

    Prefers tile=256 (full MXU occupancy on every generation), keeps >= 2 grid
    steps when possible so the "parallel" axis shards across both TensorCores
    on v7x, and halves the tile until the per-layer VMEM footprint (resident
    features + double-buffered adjacency / x / output tiles + weights) fits
    the budget.
    """
    f_max = max(_round_up(d, 128) for d in feature_dims)
    n8 = _round_up(max(n, 8), 8)
    tile = 256
    if n8 < 2 * tile:  # small graph: cap so the grid still has >= 2 steps
        tile = max(8, _round_down(n8 // 2, 8)) if n8 >= 16 else n8
    while True:
        n_pad = _round_up(n8, tile)
        need = (2 * tile * n_pad * 2      # double-buffered bf16 adjacency row tile
                + n_pad * f_max * 2       # resident (pre-projected) features, bf16
                + 2 * tile * f_max * 2    # double-buffered bf16 x row tile
                + 2 * tile * f_max * 4    # double-buffered f32 output tile
                + 3 * f_max * f_max * 2   # weights (bf16)
                + f_max * 4)              # bias (f32)
        if need <= vmem_limit or tile <= 8:
            break
        tile = max(8, _round_down(tile // 2, 8))
    # TODO(synk): for graphs where resident features / an adjacency row tile
    # still overflow VMEM at tile=8 (N_pad >~ 32k on v7x), add an inner
    # "arbitrary" grid axis over source-node columns with an f32 VMEM
    # accumulator instead of keeping full rows resident.
    return tile, _round_up(n8, tile)


# ------------------------------ kernels -------------------------------------


def _matmul_kernel(x_ref, w_ref, o_ref):
    o_ref[...] = jnp.dot(x_ref[...], w_ref[...],
                         preferred_element_type=jnp.float32).astype(o_ref.dtype)


def _project(x, w, *, tile_n, out_dtype, vmem_limit):
    """Row-tiled x @ w — runs ONCE per layer (hoisted loop-invariant xwn)."""
    n_pad, f_in = x.shape
    f_out = w.shape[1]
    return pl.pallas_call(
        _matmul_kernel,
        out_shape=jax.ShapeDtypeStruct((n_pad, f_out), out_dtype),
        grid=(n_pad // tile_n,),
        in_specs=[pl.BlockSpec((tile_n, f_in), lambda i: (i, 0)),
                  pl.BlockSpec((f_in, f_out), lambda i: (0, 0))],
        out_specs=pl.BlockSpec((tile_n, f_out), lambda i: (i, 0)),
        compiler_params=pltpu.CompilerParams(
            dimension_semantics=("parallel",),
            vmem_limit_bytes=vmem_limit),
    )(x, w)


def _graphconv_agg_kernel(x_full_ref, x_tile_ref, adj_ref, wr_ref, wn_ref,
                          b_ref, o_ref, *, relu):
    """GraphConv row tile, out_dim >= in_dim: aggregate raw features, then
    project.  Two f32-accumulated MXU dots — no in-kernel concatenations."""
    ax = jnp.dot(adj_ref[...], x_full_ref[...],
                 preferred_element_type=jnp.float32)
    acc = jnp.dot(x_tile_ref[...], wr_ref[...],
                  preferred_element_type=jnp.float32)
    acc = acc + jnp.dot(ax.astype(jnp.bfloat16), wn_ref[...],
                        preferred_element_type=jnp.float32)
    acc = acc + b_ref[...]
    if relu:
        acc = jnp.maximum(acc, 0.0)
    o_ref[...] = acc.astype(o_ref.dtype)


def _graphconv_pre_kernel(xwn_ref, x_tile_ref, adj_ref, wr_ref, b_ref, o_ref,
                          *, relu):
    """GraphConv row tile, out_dim < in_dim: neighbor projection xwn = x @ Wn
    was hoisted outside (VMEM-resident), so the N^2 aggregation contracts over
    the smaller output dim and does no redundant per-tile work."""
    acc = jnp.dot(x_tile_ref[...], wr_ref[...],
                  preferred_element_type=jnp.float32)
    acc = acc + jnp.dot(adj_ref[...], xwn_ref[...],
                        preferred_element_type=jnp.float32)
    acc = acc + b_ref[...]
    if relu:
        acc = jnp.maximum(acc, 0.0)
    o_ref[...] = acc.astype(o_ref.dtype)


def _graphconv_layer(adj, x, wr, wn, b, *, reorder, relu, out_dtype, tile_n,
                     vmem_limit):
    n_pad = adj.shape[0]
    f_in = x.shape[1]
    f_out = wr.shape[1]
    assert n_pad % tile_n == 0 and tile_n % 8 == 0
    cp = pltpu.CompilerParams(dimension_semantics=("parallel",),
                              vmem_limit_bytes=vmem_limit)
    if reorder:
        # hoisted, loop-invariant neighbor projection (computed once)
        xwn = _project(x, wn, tile_n=tile_n, out_dtype=jnp.bfloat16,
                       vmem_limit=vmem_limit)
        kernel = functools.partial(_graphconv_pre_kernel, relu=relu)
        in_specs = [
            pl.BlockSpec((n_pad, f_out), lambda i: (0, 0)),    # xwn: resident
            pl.BlockSpec((tile_n, f_in), lambda i: (i, 0)),    # x row tile (root)
            pl.BlockSpec((tile_n, n_pad), lambda i: (i, 0)),   # adjacency row tile
            pl.BlockSpec((f_in, f_out), lambda i: (0, 0)),     # W_root
            pl.BlockSpec((1, f_out), lambda i: (0, 0)),        # bias (f32)
        ]
        operands = (xwn, x, adj, wr, b)
    else:
        kernel = functools.partial(_graphconv_agg_kernel, relu=relu)
        in_specs = [
            pl.BlockSpec((n_pad, f_in), lambda i: (0, 0)),     # x: resident
            pl.BlockSpec((tile_n, f_in), lambda i: (i, 0)),    # x row tile (root)
            pl.BlockSpec((tile_n, n_pad), lambda i: (i, 0)),   # adjacency row tile
            pl.BlockSpec((f_in, f_out), lambda i: (0, 0)),     # W_root
            pl.BlockSpec((f_in, f_out), lambda i: (0, 0)),     # W_rel
            pl.BlockSpec((1, f_out), lambda i: (0, 0)),        # bias (f32)
        ]
        operands = (x, x, adj, wr, wn, b)
    return pl.pallas_call(
        kernel,
        out_shape=jax.ShapeDtypeStruct((n_pad, f_out), out_dtype),
        grid=(n_pad // tile_n,),
        in_specs=in_specs,
        out_specs=pl.BlockSpec((tile_n, f_out), lambda i: (i, 0)),
        compiler_params=cp,
    )(*operands)


# ------------------------------ model ---------------------------------------


def build_dense_adjacency(edge_index, n_pad):
    """adj[i, j] = #edges j -> i, stored bf16 (exact for multiplicity <= 256).

    Built once, outside the per-forward hot path.
    """
    # TODO(synk): for large sparse graphs, replace the O(N^2) dense adjacency
    # with a CSR edge list + PrefetchScalarGridSpec gather design.
    src, dst = edge_index[0], edge_index[1]
    adj = jnp.zeros((n_pad, n_pad), jnp.float32).at[dst, src].add(1.0)
    return adj.astype(jnp.bfloat16)


def gcn_forward(adj, x, params, *, tile_n, vmem_limit):
    """adj: bf16 [N_pad, N_pad]; x: f32 [N, nfeat]."""
    w1r, w1n, b1, w2r, w2n, b2 = params
    n, nfeat = x.shape
    nhid, nclass = w1r.shape[1], w2r.shape[1]
    n_pad = adj.shape[0]
    f_in, f_hid, f_out = (_round_up(d, 128) for d in (nfeat, nhid, nclass))

    # lane-dense padding (multiples of 128) + node padding; pads are zeros so
    # they contribute nothing to the math and are sliced off at the end.
    x_p = _pad_to(x, (n_pad, f_in)).astype(jnp.bfloat16)
    w1r_p = _pad_to(w1r, (f_in, f_hid)).astype(jnp.bfloat16)
    w1n_p = _pad_to(w1n, (f_in, f_hid)).astype(jnp.bfloat16)
    b1_p = _pad_to(b1, (1, f_hid))
    w2r_p = _pad_to(w2r, (f_hid, f_out)).astype(jnp.bfloat16)
    w2n_p = _pad_to(w2n, (f_hid, f_out)).astype(jnp.bfloat16)
    b2_p = _pad_to(b2, (1, f_out))

    # layer 1: GraphConv(nfeat -> nhid) + ReLU; h kept bf16 for layer 2's MXU.
    h = _graphconv_layer(adj, x_p, w1r_p, w1n_p, b1_p,
                         reorder=nhid < nfeat, relu=True,
                         out_dtype=jnp.bfloat16, tile_n=tile_n,
                         vmem_limit=vmem_limit)

    # dropout: eval mode (train=False) -> identity.
    # TODO(synk): training-mode dropout would use pltpu.prng_seed + stateful_bernoulli.

    # layer 2: GraphConv(nhid -> nclass)
    out = _graphconv_layer(adj, h, w2r_p, w2n_p, b2_p,
                           reorder=nclass < nhid, relu=False,
                           out_dtype=jnp.float32, tile_n=tile_n,
                           vmem_limit=vmem_limit)
    return out[:n, :nclass]


def init_params(key, nfeat, nhid, nclass):
    ks = jax.random.split(key, 6)
    s1 = 1.0 / jnp.sqrt(nfeat)
    s2 = 1.0 / jnp.sqrt(nhid)
    # weights stored [in, out] (transposed relative to nn.Linear's [out, in])
    w1r = jax.random.uniform(ks[0], (nfeat, nhid), jnp.float32, -s1, s1)
    w1n = jax.random.uniform(ks[1], (nfeat, nhid), jnp.float32, -s1, s1)
    b1 = jax.random.uniform(ks[2], (1, nhid), jnp.float32, -s1, s1)
    w2r = jax.random.uniform(ks[3], (nhid, nclass), jnp.float32, -s2, s2)
    w2n = jax.random.uniform(ks[4], (nhid, nclass), jnp.float32, -s2, s2)
    b2 = jax.random.uniform(ks[5], (1, nclass), jnp.float32, -s2, s2)
    return (w1r, w1n, b1, w2r, w2n, b2)


# ------------------------------ references ----------------------------------


def _ref_forward_f32(edge_index, x, params):
    """Pure-f32 PyG GraphConv reference."""
    n = x.shape[0]
    src, dst = edge_index[0], edge_index[1]
    adj = jnp.zeros((n, n), jnp.float32).at[dst, src].add(1.0)
    w1r, w1n, b1, w2r, w2n, b2 = params
    h = jnp.maximum(x @ w1r + (adj @ x) @ w1n + b1, 0.0)
    return h @ w2r + (adj @ h) @ w2n + b2


def _ref_forward_bf16(edge_index, x, params):
    """Reference mirroring the kernel's bf16 operands + contraction order."""
    bf = jnp.bfloat16
    n = x.shape[0]
    src, dst = edge_index[0], edge_index[1]
    adj = jnp.zeros((n, n), jnp.float32).at[dst, src].add(1.0).astype(bf)
    w1r, w1n, b1, w2r, w2n, b2 = params

    def layer(xb, wr, wn, b, relu, reorder):
        if reorder:
            xwn = jnp.dot(xb, wn.astype(bf),
                          preferred_element_type=jnp.float32).astype(bf)
            acc = (jnp.dot(xb, wr.astype(bf), preferred_element_type=jnp.float32)
                   + jnp.dot(adj, xwn, preferred_element_type=jnp.float32))
        else:
            ax = jnp.dot(adj, xb, preferred_element_type=jnp.float32)
            acc = (jnp.dot(xb, wr.astype(bf), preferred_element_type=jnp.float32)
                   + jnp.dot(ax.astype(bf), wn.astype(bf),
                             preferred_element_type=jnp.float32))
        acc = acc + b
        return jnp.maximum(acc, 0.0) if relu else acc

    nfeat, nhid = w1r.shape
    nclass = w2r.shape[1]
    h = layer(x.astype(bf), w1r, w1n, b1, True, reorder=nhid < nfeat).astype(bf)
    return layer(h, w2r, w2n, b2, False, reorder=nclass < nhid)


# ------------------------------ demo -----------------------------------------


if __name__ == "__main__":
    N, NFEAT, NHID, NCLASS, E = 64, 16, 32, 8, 256

    key = jax.random.PRNGKey(0)
    kx, ke, kp = jax.random.split(key, 3)

    x = jax.random.normal(kx, (N, NFEAT), jnp.float32)
    edge_index = jax.random.randint(ke, (2, E), 0, N, dtype=jnp.int32)
    params = init_params(kp, NFEAT, NHID, NCLASS)

    vmem_limit = _vmem_limit_bytes()
    tile_n, n_pad = _choose_tiling(N, (NFEAT, NHID, NCLASS), vmem_limit)

    adj = build_dense_adjacency(edge_index, n_pad)   # built once, bf16

    out = gcn_forward(adj, x, params, tile_n=tile_n, vmem_limit=vmem_limit)
    out = jax.block_until_ready(out)
    assert out.shape == (N, NCLASS)

    # tight check vs a reference that matches the kernel's bf16 math exactly
    ref_bf16 = _ref_forward_bf16(edge_index, x, params)
    err_bf16 = float(jnp.max(jnp.abs(out - ref_bf16)))
    assert jnp.allclose(out, ref_bf16, atol=2e-2, rtol=2e-2), err_bf16

    # loose sanity check vs the pure-f32 PyG semantics (bf16 operand rounding)
    ref_f32 = _ref_forward_f32(edge_index, x, params)
    err_f32 = float(jnp.max(jnp.abs(out - ref_f32)))
    assert jnp.allclose(out, ref_f32, atol=0.25, rtol=5e-2), err_f32

    print("KERNEL_OK")
</pallas_src>

<mosaic_0001>
module attributes {stable_mosaic.version = 11 : i64} {
  func.func @_graphconv_agg_kernel(%arg0: i32, %arg1: memref<64x128xbf16, #tpu.memory_space<vmem>>, %arg2: memref<32x128xbf16, #tpu.memory_space<vmem>>, %arg3: memref<32x64xbf16, #tpu.memory_space<vmem>>, %arg4: memref<128x128xbf16, #tpu.memory_space<vmem>>, %arg5: memref<128x128xbf16, #tpu.memory_space<vmem>>, %arg6: memref<1x128xf32, #tpu.memory_space<vmem>>, %arg7: memref<32x128xbf16, #tpu.memory_space<vmem>>) attributes {dimension_semantics = [#tpu.dimension_semantics<parallel>], iteration_bounds = array<i64: 2>, scalar_prefetch = 0 : i64, scratch_operands = 0 : i64, tpu.core_type = #tpu.core_type<tc>, window_params = [{pipeline_mode = #tpu.pipeline_mode<synchronous>, transform_indices = @transform_0, window_bounds = array<i64: 64, 128>}, {transform_indices = @transform_1, window_bounds = array<i64: 32, 128>}, {transform_indices = @transform_2, window_bounds = array<i64: 32, 64>}, {pipeline_mode = #tpu.pipeline_mode<synchronous>, transform_indices = @transform_3, window_bounds = array<i64: 128, 128>}, {pipeline_mode = #tpu.pipeline_mode<synchronous>, transform_indices = @transform_4, window_bounds = array<i64: 128, 128>}, {pipeline_mode = #tpu.pipeline_mode<synchronous>, transform_indices = @transform_5, window_bounds = array<i64: 1, 128>}, {transform_indices = @transform_6, window_bounds = array<i64: 32, 128>}]} {
    %c0 = arith.constant 0 : index
    %c0_0 = arith.constant 0 : index
    %0 = vector.load %arg3[%c0, %c0_0] : memref<32x64xbf16, #tpu.memory_space<vmem>>, vector<32x64xbf16>
    %c0_1 = arith.constant 0 : index
    %c0_2 = arith.constant 0 : index
    %1 = vector.load %arg1[%c0_1, %c0_2] : memref<64x128xbf16, #tpu.memory_space<vmem>>, vector<64x128xbf16>
    %cst = arith.constant dense<0.000000e+00> : vector<32x128xf32>
    %2 = tpu.matmul %0, %1, %cst {dimension_numbers = #tpu.dot_dimension_numbers<[1], [0], [0], [1], [0, 0, 1, 1], [], []>} : vector<32x64xbf16>, vector<64x128xbf16>, vector<32x128xf32> -> vector<32x128xf32>
    %c0_3 = arith.constant 0 : index
    %c0_4 = arith.constant 0 : index
    %3 = vector.load %arg2[%c0_3, %c0_4] : memref<32x128xbf16, #tpu.memory_space<vmem>>, vector<32x128xbf16>
    %c0_5 = arith.constant 0 : index
    %c0_6 = arith.constant 0 : index
    %4 = vector.load %arg4[%c0_5, %c0_6] : memref<128x128xbf16, #tpu.memory_space<vmem>>, vector<128x128xbf16>
    %cst_7 = arith.constant dense<0.000000e+00> : vector<32x128xf32>
    %5 = tpu.matmul %3, %4, %cst_7 {dimension_numbers = #tpu.dot_dimension_numbers<[1], [0], [0], [1], [0, 0, 1, 1], [], []>} : vector<32x128xbf16>, vector<128x128xbf16>, vector<32x128xf32> -> vector<32x128xf32>
    %6 = arith.truncf %2 : vector<32x128xf32> to vector<32x128xbf16>
    %c0_8 = arith.constant 0 : index
    %c0_9 = arith.constant 0 : index
    %7 = vector.load %arg5[%c0_8, %c0_9] : memref<128x128xbf16, #tpu.memory_space<vmem>>, vector<128x128xbf16>
    %cst_10 = arith.constant dense<0.000000e+00> : vector<32x128xf32>
    %8 = tpu.matmul %6, %7, %cst_10 {dimension_numbers = #tpu.dot_dimension_numbers<[1], [0], [0], [1], [0, 0, 1, 1], [], []>} : vector<32x128xbf16>, vector<128x128xbf16>, vector<32x128xf32> -> vector<32x128xf32>
    %9 = arith.addf %5, %8 : vector<32x128xf32>
    %c0_11 = arith.constant 0 : index
    %c0_12 = arith.constant 0 : index
    %10 = vector.load %arg6[%c0_11, %c0_12] : memref<1x128xf32, #tpu.memory_space<vmem>>, vector<1x128xf32>
    %11 = vector.broadcast %10 : vector<1x128xf32> to vector<32x128xf32>
    %12 = arith.addf %9, %11 : vector<32x128xf32>
    %cst_13 = arith.constant 0.000000e+00 : f32
    %13 = vector.broadcast %cst_13 : f32 to vector<32x128xf32>
    %14 = arith.maximumf %12, %13 : vector<32x128xf32>
    %15 = arith.truncf %14 : vector<32x128xf32> to vector<32x128xbf16>
    %c0_14 = arith.constant 0 : index
    %c0_15 = arith.constant 0 : index
    %16 = vector.load %arg7[%c0_14, %c0_15] : memref<32x128xbf16, #tpu.memory_space<vmem>>, vector<32x128xbf16>
    tpu.vector_store %arg7[%c0_14, %c0_15], %15 {strides = array<i32>} : memref<32x128xbf16, #tpu.memory_space<vmem>>, vector<32x128xbf16>,
    return
  }
  func.func @transform_0(%arg0: i32) -> (i32, i32) {
    %c0_i32 = arith.constant 0 : i32
    %c0_i32_0 = arith.constant 0 : i32
    %c0_i32_1 = arith.constant 0 : i32
    return %c0_i32, %c0_i32_0 : i32, i32
  }
  func.func @transform_1(%arg0: i32) -> (i32, i32) {
    %c0_i32 = arith.constant 0 : i32
    %c0_i32_0 = arith.constant 0 : i32
    return %arg0, %c0_i32 : i32, i32
  }
  func.func @transform_2(%arg0: i32) -> (i32, i32) {
    %c0_i32 = arith.constant 0 : i32
    %c0_i32_0 = arith.constant 0 : i32
    return %arg0, %c0_i32 : i32, i32
  }
  func.func @transform_3(%arg0: i32) -> (i32, i32) {
    %c0_i32 = arith.constant 0 : i32
    %c0_i32_0 = arith.constant 0 : i32
    %c0_i32_1 = arith.constant 0 : i32
    return %c0_i32, %c0_i32_0 : i32, i32
  }
  func.func @transform_4(%arg0: i32) -> (i32, i32) {
    %c0_i32 = arith.constant 0 : i32
    %c0_i32_0 = arith.constant 0 : i32
    %c0_i32_1 = arith.constant 0 : i32
    return %c0_i32, %c0_i32_0 : i32, i32
  }
  func.func @transform_5(%arg0: i32) -> (i32, i32) {
    %c0_i32 = arith.constant 0 : i32
    %c0_i32_0 = arith.constant 0 : i32
    %c0_i32_1 = arith.constant 0 : i32
    return %c0_i32, %c0_i32_0 : i32, i32
  }
  func.func @transform_6(%arg0: i32) -> (i32, i32) {
    %c0_i32 = arith.constant 0 : i32
    %c0_i32_0 = arith.constant 0 : i32
    return %arg0, %c0_i32 : i32, i32
  }
}

</mosaic_0001>

<bundles_post_ra>
// kernel: tpu_custom_call.1
= control target key start
LH: loop header
LB: loop body
LE: loop exit
PB: predicated region body
PF: predicated region fallthrough
CT: control target
= control target key end

     0   :  { %s1525_s0 = inlined_call_operand.hbm [shape: bf16[64,128], index: 0, kind: input, shape index: {}]   ;;  %s1526_s1 = inlined_call_operand.hbm [shape: bf16[64,128], index: 1, kind: input, shape index: {}]   ;;  %s1527_s2 = inlined_call_operand.hbm [shape: bf16[64,64], index: 2, kind: input, shape index: {}]   ;;  %s1528_s3 = inlined_call_operand.hbm [shape: bf16[128,128], index: 3, kind: input, shape index: {}]   ;;  %s1529_s4 = inlined_call_operand.hbm [shape: bf16[128,128], index: 4, kind: input, shape index: {}]   ;;  %s1530_s5 = inlined_call_operand.vmem [shape: f32[1,128], index: 5, kind: input, shape index: {}]   ;;  %s1531_s6 = inlined_call_operand.hbm [shape: bf16[64,128], index: 6, kind: output, shape index: {}]  }
   0x1   :  { %1541 = sst [smem:[#allocation20_spill]] %s1526_s1 }
   0x2   :  { %1542 = sst [smem:[#allocation21_spill]] %s1528_s3 }
   0x3   :  { %11 = vsyncpa [#allocation3], 0 }
   0x4   :  { %12 = vsyncpa [#allocation6], 0 }
   0x5   :  { %14 = vsyncpa [#allocation6 + $0x1], 0 }
   0x6   :  { %15 = vsyncpa [#allocation9], 0 }
   0x7   :  { %16 = vsyncpa [#allocation4], 0 }
   0x8   :  { %18 = vsyncpa [#allocation4 + $0x1], 0  ;;  %s1304_s21 = smov 0   ;;  %s1306_s22 = smov 0  }
   0x9   :  { %s1308_s23 = smov 0   ;;  %s1310_s24 = smov 0  }
   0xa LB: > { %1543 = sst [smem:[#allocation16_spill]] %s1256_s23  ;;  %s1325_s25 = sadd.s32 4294967295, %s1260_s24   ;;  %s1260_s24 = sphi %s1310_s24, %s1563_s24   ;;  %s1256_s23 = sphi %s1308_s23, %s1565_s23   ;;  %s1252_s22 = sphi %s1306_s22, %s1567_s22   ;;  %s1248_s21 = sphi %s1304_s21, %s1566_s21  }
   0xb   : > { %1544 = sst [smem:[#allocation17_spill]] %s1260_s24  ;;  %s781_s26 = sadd.s32 4294967294, %s1260_s24  }
   0xc   : > { %p65_p0 = scmp.ne.s32.totalorder %s1252_s22, %s1248_s21  ;;  %p1539_p1 = scmp.eq.s32.totalorder %s1325_s25, 0 }
   0xd   : > { %p178_p2 = scmp.eq.s32.totalorder %s1325_s25, 1  ;;  %p184_p3 = scmp.eq.s32.totalorder %s781_s26, 1 }
   0xe   : > { %p1334_p4 = por %p1539_p1, %p65_p0  ;;  %p782_p5 = scmp.ge.s32.totalorder %s1260_s24, 1 }
   0xf   : > { %p1339_p6 = por %p184_p3, %p65_p0  ;;  %p191_p7 = scmp.lt.s32.totalorder %s1260_s24, 3 }
  0x10   : > { %s1548_s3 = sld [smem:[#allocation21_spill]]  ;;  %s1262_s9 = smov [#allocation8]  }
  0x11   : > { %p1344_p8 = pnand %p782_p5, %p191_p7  ;;  %s218_s10 = sshll.u32 %s1262_s9, 4  ;;  %s219_s10 = int_to_ptr.vmem [resolvable:$true] %s218_s10 }
  0x12   : > { %s1361_s12 = sadd.s32 1, %s1260_s24   ;;  %s1532_s13 = smov 64  }
  0x13   : > { %p967_p9 = pneg %p1344_p8  ;;  %1550 = sst [smem:[#allocation18_spill]] %s1361_s12 }
  0x14   : > { %s1534_s14 = smov 4   ;;  %s49_s15 = ssub.s32 %s1260_s24, %s1361_s12 }
  0x15   : > { %p1356_p11 = pnand %p967_p9, %p1539_p1  ;;  %s52_s16 = sadd.s32 1, %s1256_s23 }
  0x16   : > { %s216_s8 = sshll.u32 %s1548_s3, 4  ;;  %p50_p12 = scmp.eq.s32.totalorder %s49_s15, 0  ;;  %s217_s8 = int_to_ptr.hbm [resolvable:$true] %s216_s8 }
  0x17   : > { %973 = dma.hbm_to_vmem [thread:$0]  (!%p1356_p11), %s217_s8, 1024, %s219_s10, [#allocation9], %s1532_s13, %s1532_s13, %s1534_s14  }
  0x18   : > { %p59_p13 = scmp.ne.s32.totalorder %s1256_s23, %s1252_s22  ;;  %p60_p0 = scmp.eq.s32.totalorder %s1260_s24, 0 }
  0x19   : > { %p991_p3 = scmp.lt.s32.totalorder %s1260_s24, 2  ;;  %s249_s19 = sand.u32 1, %s1260_s24  }
  0x1a   : > { %s1376_s17 = scalar_select %p50_p12, %s1256_s23, %s52_s16  }
  0x1b   : > { %p61_p5 = por %p60_p0, %p59_p13  ;;  %p1380_p7 = por %p178_p2, %p59_p13 }
  0x1c   : > { %1551 = sst [smem:[#allocation19_spill]] %s1376_s17  ;;  %s251_s20 = sand.u32 1, %s1256_s23  }
  0x1d   : > { %s1386_s26 = sshll.u32 %s251_s20, 4  ;;  %s903_s30 = sshll.u32 %s1260_s24, 4 }
  0x1e   : > { %s1553_s1 = sld [smem:[#allocation20_spill]]  ;;  %s253_s10 = scalar_lea.vmem [#allocation5], %s1386_s26 }
  0x1f   : > { %s261_s15 = sshll.u32 %s253_s10, 4  ;;  %p1395_p2 = pnand %p991_p3, %p61_p5  ;;  %s262_s15 = int_to_ptr.vmem [resolvable:$true] %s261_s15 }
  0x20   : > { %s280_s20 = scalar_lea.hbm %s1527_s2, %s903_s30  ;;  %s1402_s23 = scalar_lea.sflag [#allocation6], %s249_s19 }
  0x21   : > { %s281_s17 = sshll.u32 %s280_s20, 4  ;;  %p1070_p12 = pneg %p1395_p2  ;;  %s1421_s17 = int_to_ptr.hbm [resolvable:$true] %s281_s17 }
  0x24   : > { %s258_s9 = scalar_lea.hbm %s1553_s1, %s903_s30  ;;  %s1073_s3 = scalar_lea.hbm %s1553_s1, 32 }
  0x25   : > { %s259_s16 = sshll.u32 %s258_s9, 4  ;;  %s260_s16 = int_to_ptr.hbm [resolvable:$true] %s259_s16 }
  0x26   : > { %s1066_s7 = sshra.s32 %s260_s16, 4  ;;  %s1067_s7 = int_to_ptr.hbm [resolvable:$true] %s1066_s7 }
  0x27   : > { %s1068_s8 = scalar_lea.hbm %s1067_s7, 16  ;;  %p1074_p3 = scmp.lt.s32.totalorder %s1067_s7, %s1553_s1 }
  0x28   : > { %p1069_p9 = scmp.ne.s32.totalorder %s1067_s7, %s1068_s8  ;;  %p1075_p5 = scmp.lt.s32.totalorder %s1073_s3, %s1068_s8 }
  0x2a   : > { %p1071_p13 = pnand %p1070_p12, %p1069_p9  ;;  %p1076_p10 = por %p1075_p5, %p1074_p3 }
  0x2c   : > { %p1072_p0 = pneg %p1071_p13 }
  0x2e   : > { %p1077_p1 = pnand %p1076_p10, %p1072_p0 }
  0x30   : > { %1080 = shalt.err (!%p1077_p1)
}
  0x31   : > { %s1555_s19 = smov 4   ;;  %s1556_s30 = smov 64  }
  0x32   : > { %980 = dma.hbm_to_vmem [thread:$0]  (!%p1395_p2), %s260_s16, 256, %s262_s15, %s1402_s23, %s1556_s30, %s1556_s30, %s1555_s19  }
  0x33   : > { %s202_s12 = sshll.u32 %s1525_s0, 4  ;;  %s1265_s7 = smov [#allocation2]   ;;  %s203_s12 = int_to_ptr.hbm [resolvable:$true] %s202_s12 }
  0x34   : > { %s204_s8 = sshll.u32 %s1265_s7, 4  ;;  %s230_s14 = sshll.u32 %s1529_s4, 4  ;;  %s205_s8 = int_to_ptr.vmem [resolvable:$true] %s204_s8  ;;  %s231_s14 = int_to_ptr.hbm [resolvable:$true] %s230_s14 }
  0x35   : > { %s275_s1 = scalar_lea.vmem [#allocation7], %s1386_s26  ;;  %s1266_s15 = smov [#allocation10]  }
  0x36   : > { %s283_s24 = sshll.u32 %s275_s1, 4  ;;  %s232_s16 = sshll.u32 %s1266_s15, 4  ;;  %s284_s24 = int_to_ptr.vmem [resolvable:$true] %s283_s24  ;;  %s233_s16 = int_to_ptr.vmem [resolvable:$true] %s232_s16 }
  0x37   : > { %970 = dma.hbm_to_vmem [thread:$0]  (!%p1356_p11), %s203_s12, 512, %s205_s8, [#allocation3], %s1556_s30, %s1556_s30, %s1555_s19  }
  0x38   : > { %976 = dma.hbm_to_vmem [thread:$0]  (!%p1356_p11), %s231_s14, 1024, %s233_s16, [#allocation9], %s1556_s30, %s1556_s30, %s1555_s19  }
  0x39   : > { %s1156_s20 = sshra.s32 %s1421_s17, 4  ;;  %s1163_s12 = scalar_lea.hbm %s1527_s2, 32  ;;  %s1157_s20 = int_to_ptr.hbm [resolvable:$true] %s1156_s20 }
  0x3a   : > { %s1158_s26 = scalar_lea.hbm %s1157_s20, 16  ;;  %p1164_p13 = scmp.lt.s32.totalorder %s1157_s20, %s1527_s2 }
  0x3b   : > { %p1159_p1 = scmp.ne.s32.totalorder %s1157_s20, %s1158_s26  ;;  %p1165_p0 = scmp.lt.s32.totalorder %s1163_s12, %s1158_s26 }
  0x3d   : > { %p1161_p10 = pnand %p1159_p1, %p1070_p12  ;;  %p1166_p3 = por %p1165_p0, %p1164_p13 }
  0x3f   : > { %p1162_p9 = pneg %p1161_p10 }
  0x41   : > { %p1167_p5 = pnand %p1166_p3, %p1162_p9 }
  0x43   : > { %1170 = shalt.err (!%p1167_p5)
}
  0x44   : > { %983 = dma.hbm_to_vmem [thread:$0]  (!%p1395_p2), %s1421_s17, 256, %s284_s24, %s1402_s23, %s1556_s30, %s1556_s30, %s1555_s19  }
  0x45   : > { %295 = sbr.rel (%p1344_p8) target bundleno = 402 (0x192), region = 44  ;;  %p1557_p11 = scmp.eq.s32.totalorder (!%p1344_p8), %s1325_s25, 0 }
  0x4a   : > { %1231 = dma.done.wait (%p1557_p11), [#allocation3], 512   ;;  %p1558_p12 = pmov %p1557_p11 }
  0x4b   : > { %s302_s11 = sand.u32 1, %s1325_s25   ;;  %s304_s13 = sand.u32 1, %s1252_s22  }
  0x4c   : > { %1233 = vsyncadd (%p1558_p12), [#allocation3], 4294966784  ;;  %s1467_s10 = sshll.u32 %s304_s13, 4  ;;  %s303_s23 = scalar_lea.sflag [#allocation6], %s302_s11 }
  0x4d   : > { %s306_s24 = scalar_lea.vmem [#allocation5], %s1467_s10 }
  0x4e   : > { %1235 = dma.done.wait (%p1334_p4), %s303_s23, 512  }
  0x4f   : > { %1237 = vsyncadd (%p1334_p4), %s303_s23, 4294966784  ;;  %s316_s29 = scalar_lea.vmem [#allocation7], %s1467_s10  ;;  %p1559_p8 = pmov %p1557_p11 }
  0x51   : > { %1239 = dma.done.wait (%p1559_p8), [#allocation9], 2048   ;;  %p1560_p2 = pmov %p1559_p8 }
  0x52   : > { %v910_v0 = vld [vmem:[#allocation2 + $0x18] sm:$0xff]  ;;  %v909_v1 = vld [vmem:[#allocation2 + $0x10] sm:$0xff]  ;;  %v908_v6 = vld [vmem:[#allocation2 + $0x8] sm:$0xff]  ;;  %vm411_vm0 = vcmask 523264   ;;  %s360_s19 = scalar_lea.vmem [#allocation11], %s1467_s10  ;;  %s929_s30 = sshll.u32 %s1325_s25, 4 }
  0x53   : > { %1241 = vsyncadd (%p1560_p2), [#allocation9], 4294965248  ;;  %422 = vmatpush.bf16.msra.mxu0 %v910_v0  ;;  %v920_v2 = vld [vmem:[#allocation8 + $0x38] sm:$0xff]  ;;  %v919_v4 = vld [vmem:[#allocation8 + $0x30] sm:$0xff]  ;;  %s653_s15 = scalar_lea.hbm %s1531_s6, %s929_s30  ;;  %s654_s16 = sshll.u32 %s360_s19, 4  ;;  %s655_s16 = int_to_ptr.vmem [resolvable:$true] %s654_s16 }
  0x54   : > { %v928_v3 = vld [vmem:[#allocation10 + $0x38] sm:$0xff]  ;;  %602 = vmatpush.bf16.msra.mxu2 %v920_v2  ;;  %v927_v5 = vld [vmem:[#allocation10 + $0x30] sm:$0xff]  ;;  %v918_v7 = vld [vmem:[#allocation8 + $0x28] sm:$0xff]  ;;  %s656_s20 = sshll.u32 %s653_s15, 4  ;;  %s642_s25 = scalar_lea.sflag [#allocation4], %s304_s13  ;;  %s657_s20 = int_to_ptr.hbm [resolvable:$true] %s656_s20 }
  0x55   : > { %523 = vmatpush.bf16.msra.mxu1 %v928_v3  ;;  %941 = vmatpush.bf16.msra.mxu3 %v928_v3  ;;  %v926_v8 = vld [vmem:[#allocation10 + $0x28] sm:$0xff]  ;;  %v907_v9 = vld [vmem:[#allocation2] sm:$0xff]  ;;  %v916_v13 = vld [vmem:[#allocation8 + $0x18] sm:$0xff]  ;;  %s1200_s26 = sshra.s32 %s657_s20, 4  ;;  %s1206_s7 = scalar_lea.hbm %s1531_s6, 32  ;;  %s1201_s26 = int_to_ptr.hbm [resolvable:$true] %s1200_s26 }
  0x56   : > { %v917_v10 = vld [vmem:[#allocation8 + $0x20] sm:$0xff]  ;;  %v924_v14 = vld [vmem:[#allocation10 + $0x18] sm:$0xff]  ;;  %v915_v15 = vld [vmem:[#allocation8 + $0x10] sm:$0xff]  ;;  %s1202_s1 = scalar_lea.hbm %s1201_s26, 16  ;;  %p1207_p9 = scmp.lt.s32.totalorder %s1201_s26, %s1531_s6 }
  0x57   : > { %423 = vmatpush.bf16.msra.mxu0 %v909_v1  ;;  %v925_v11 = vld [vmem:[#allocation10 + $0x20] sm:$0xff]  ;;  %v914_v16 = vld [vmem:[#allocation8 + $0x8] sm:$0xff]  ;;  %v923_v18 = vld [vmem:[#allocation10 + $0x10] sm:$0xff]  ;;  %p1203_p4 = scmp.ne.s32.totalorder %s1201_s26, %s1202_s1  ;;  %p1208_p13 = scmp.lt.s32.totalorder %s1206_s7, %s1202_s1 }
  0x58   : > { %603 = vmatpush.bf16.msra.mxu2 %v919_v4  ;;  %v905_v12 = vld [vmem:[%s316_s29] sm:$0xff]  ;;  %v906_v17 = vld [vmem:[%s316_s29 + $0x8] sm:$0xff] }
  0x59   : > { %524 = vmatpush.bf16.msra.mxu1 %v927_v5  ;;  %942 = vmatpush.bf16.msra.mxu3 %v927_v5  ;;  %v913_v19 = vld [vmem:[#allocation8] sm:$0xff]  ;;  %v922_v21 = vld [vmem:[#allocation10 + $0x8] sm:$0xff]  ;;  %p1204_p1 = pnand %p1203_p4, %p1380_p7  ;;  %p1209_p0 = por %p1208_p13, %p1207_p9 }
  0x5a   : > { %v911_v20 = vld [vmem:[%s306_s24] sm:$0xff]  ;;  %v912_v23 = vld [vmem:[%s306_s24 + $0x8] sm:$0xff] }
  0x5b   : > { %424 = vmatpush.bf16.msra.mxu0 %v908_v6  ;;  %v921_v22 = vld [vmem:[#allocation10] sm:$0xff]  ;;  %p1205_p10 = pneg %p1204_p1 }
  0x5c   : > { %604 = vmatpush.bf16.msra.mxu2 %v918_v7  ;;  %v1035_v33 = vld [vmem:[%s1530_s5] ss:$0 sm:$0xff] }
  0x5d   : > { %525 = vmatpush.bf16.msra.mxu1 %v926_v8  ;;  %943 = vmatpush.bf16.msra.mxu3 %v926_v8  ;;  %p1210_p3 = pnand %p1209_p0, %p1205_p10 }
  0x5f   : > { %425 = vmatpush.bf16.msra.mxu0 %v907_v9 }
  0x60   : > { %605 = vmatpush.bf16.msra.mxu2 %v917_v10 }
  0x61   : > { %526 = vmatpush.bf16.msra.mxu1 %v925_v11  ;;  %944 = vmatpush.bf16.msra.mxu3 %v925_v11 }
  0x62   : > { %824 = vmatmul.msk.bf16.vlgmr.msra.gmra.mxu0 %vm411_vm0, %v905_v12 }
  0x64   : > { %606 = vmatpush.bf16.msra.mxu2 %v916_v13 }
  0x65   : > { %527 = vmatpush.bf16.msra.mxu1 %v924_v14  ;;  %945 = vmatpush.bf16.msra.mxu3 %v924_v14 }
  0x68   : > { %607 = vmatpush.bf16.msra.mxu2 %v915_v15 }
  0x69   : > { %528 = vmatpush.bf16.msra.mxu1 %v923_v18  ;;  %946 = vmatpush.bf16.msra.mxu3 %v923_v18 }
  0x6c   : > { %608 = vmatpush.bf16.msra.mxu2 %v914_v16 }
  0x6d   : > { %529 = vmatpush.bf16.msra.mxu1 %v922_v21  ;;  %947 = vmatpush.bf16.msra.mxu3 %v922_v21 }
  0x70   : > { %609 = vmatpush.bf16.msra.mxu2 %v913_v19 }
  0x71   : > { %530 = vmatpush.bf16.msra.mxu1 %v921_v22  ;;  %948 = vmatpush.bf16.msra.mxu3 %v921_v22 }
  0x72   : > { %825 = vmatmul.msk.bf16.gmra.mxu0 %vm411_vm0, %v906_v17 }
  0x73   : > { %610 = vmatmul.bf16.vlgmr.msra.gmra.mxu2 %v911_v20 }
  0x83   : > { %615 = vmatmul.bf16.gmra.mxu2 %v912_v23 }
  0xdf   : > { %v427_v24 = vpop.f32.mrf.mxu0 }
  0xe7   : > { %v429_v25 = vpop.f32.mrf.mxu0 }
  0xe8   : > { %v457_v26 = vpack.c.bf16 %v429_v25, %v427_v24 }
  0xea   : > { %531 = vmatmul.bf16.vlgmr.msra.gmra.mxu1 %v457_v26 }
  0xef   : > { %v432_v27 = vpop.f32.mrf.mxu0 }
  0xf6   : > { %v611_v30 = vpop.f32.mrf.mxu2 }
  0xf7   : > { %v434_v28 = vpop.f32.mrf.mxu0 }
  0xf8   : > { %v458_v29 = vpack.c.bf16 %v434_v28, %v432_v27 }
  0xfa   : > { %536 = vmatmul.bf16.vlgmr.msra.gmra.mxu3 %v458_v29 }
  0xfe   : > { %v613_v34 = vpop.f32.mrf.mxu2 }
 0x106   : > { %v616_v42 = vpop.f32.mrf.mxu2 }
 0x10e   : > { %v618_v45 = vpop.f32.mrf.mxu2 }
 0x167   : > { %v532_v31 = vpop.f32.mrf.mxu1 }
 0x168   : > { %v612_v32 = vadd.f32 %v611_v30, %v532_v31 }
 0x16a   : > { %v625_v36 = vadd.f32 %v1035_v33, %v612_v32 }
 0x16c   : > { %v629_v39 = vmax.f32 %v625_v36, 0.0 }
 0x16f   : > { %v534_v35 = vpop.f32.mrf.mxu1 }
 0x170   : > { %v614_v37 = vadd.f32 %v613_v34, %v534_v35 }
 0x172   : > { %v626_v38 = vadd.f32 %v1035_v33, %v614_v37 }
 0x174   : > { %v630_v40 = vmax.f32 %v626_v38, 0.0 }
 0x176   : > { %v933_v41 = vpack.c.bf16 %v630_v40, %v629_v39 }
 0x178   : > { %934 = vst [vmem:[%s360_s19] sm:$0xff] %v933_v41  }
 0x17d   : > { %v537_v43 = vpop.f32.mrf.mxu3 }
 0x17e   : > { %v617_v44 = vadd.f32 %v616_v42, %v537_v43 }
 0x180   : > { %v627_v47 = vadd.f32 %v1035_v33, %v617_v44 }
 0x182   : > { %v631_v50 = vmax.f32 %v627_v47, 0.0 }
 0x185   : > { %v539_v46 = vpop.f32.mrf.mxu3 }
 0x186   : > { %v619_v48 = vadd.f32 %v618_v45, %v539_v46 }
 0x188   : > { %v628_v49 = vadd.f32 %v1035_v33, %v619_v48 }
 0x18a   : > { %v632_v51 = vmax.f32 %v628_v49, 0.0 }
 0x18c   : > { %v938_v52 = vpack.c.bf16 %v632_v51, %v631_v50 }
 0x18e   : > { %940 = vst [vmem:[%s360_s19 + $0x8] sm:$0xff] %v938_v52  }
 0x18f   : > { %1213 = shalt.err (!%p1210_p3)
}
 0x190   : > { %s1267_s13 = smov 64   ;;  %s1268_s10 = smov 4  }
 0x191   : > { %965 = dma.vmem_to_hbm [thread:$0]  (%p1380_p7), %s655_s16, 256, %s657_s20, %s642_s25, %s1267_s13, %s1267_s13, %s1268_s10  }
 0x192 PF: > { %s1561_s23 = sld [smem:[#allocation17_spill]]  ;;  %s671_s24 = sand.u32 1, %s1248_s21  }
 0x193   : > { %s672_s29 = scalar_lea.sflag [#allocation4], %s671_s24 }
 0x198   : > { %p1562_p5 = scmp.ge.s32.totalorder %s1561_s23, 2 }
 0x19a   : > { %p985_p11 = pnand %p1562_p5, %p1339_p6 }
 0x19c   : > { %p986_p12 = pneg %p985_p11 }
 0x19e   : > { %1243 = dma.done.wait (%p986_p12), %s672_s29, 256  }
 0x19f   : > { %1245 = vsyncadd (%p986_p12), %s672_s29, 4294967040  ;;  %s1563_s24 = sld [smem:[#allocation18_spill]]  ;;  %s1566_s21 = smov %s1252_s22 }
 0x1a0   : > { %s1564_s27 = sld [smem:[#allocation16_spill]] }
 0x1a1   : > { %s1565_s23 = sld [smem:[#allocation19_spill]] }
 0x1a5   : > { %p21_p8 = scmp.ge.s32.totalorder %s1563_s24, 4  }
 0x1a6   : > { %s1567_s22 = smov %s1564_s27 }
 0x1a7   :  { %23 = sbr.rel (!%p21_p8) target bundleno = 10 (0xa), region = 113 }
 0x1ac   :  { %678 = vsyncpa [#allocation3], 1 }
 0x1ad   :  { %680 = vsyncpa [#allocation3 + $0x1], 1 }
 0x1ae   :  { %681 = vsyncpa [#allocation6], 1 }
 0x1af   :  { %683 = vsyncpa [#allocation6 + $0x1], 1 }
 0x1b0   :  { %684 = vsyncpa [#allocation9], 1 }
 0x1b1   :  { %685 = vsyncpa [#allocation4], 1 }
 0x1b2   :  { %687 = vsyncpa [#allocation4 + $0x1], 1 }

</bundles_post_ra>
